<compile_context>
chip_gen: v6e
topology: v6e:2x2x1
jax: 0.10.0
libtpu: 0.0.40
codegen_flags: <defaults>
</compile_context>

<pallas_src>
import functools

import jax
import jax.numpy as jnp
from jax.experimental import pallas as pl
from jax.experimental.pallas import tpu as pltpu

LANE = 128
SUBLANE = 8


def _round_up(n, m):
    return ((n + m - 1) // m) * m


def dqn_kernel(x_ref, w1_ref, w2b_ref, o_ref):
    # x_ref   : (TB, OBS+1)    f32  -- last column is ones (b1 folded into w1)
    # w1_ref  : (OBS+1, H)     f32  -- last row is b1
    # w2b_ref : (H+8, A_pad)   f32  -- rows [0,H) = w2 (lanes >= A zero),
    #                                  row H = b2 (lanes >= A zero), rest zero
    # o_ref   : (TB, A_pad)    f32  -- lane-dense output slab (sliced in wrapper)
    h_dim = w1_ref.shape[1]

    # Layer 1 (+ folded bias) + ReLU.  K = OBS+1 is tiny but a single MXU pass.
    h = jnp.dot(x_ref[...], w1_ref[...], preferred_element_type=jnp.float32)
    h = jnp.maximum(h, 0.0)

    # Layer 2: lane-dense weight slab; bias row packed in the same buffer
    # (static ref slices -> zero-cost views, sublane-aligned loads).
    w2 = w2b_ref[:h_dim, :]
    b2 = w2b_ref[h_dim:h_dim + 1, :]
    out = jnp.dot(h, w2, preferred_element_type=jnp.float32) + b2

    o_ref[...] = out.astype(o_ref.dtype)


@functools.partial(jax.jit, static_argnames=("block_b",))
def dqn_forward(x, w1, b1, w2, b2, *, block_b=512):
    """Fused Linear->ReLU->Linear.  x: (B, OBS); weights stored as (in, out)."""
    B, obs = x.shape
    H = w1.shape[1]
    A = w2.shape[1]
    a_pad = _round_up(A, LANE)

    # Batch tile: big enough to amortize ~0.35 us/step grid overhead, small
    # enough that padded x/out tiles stay far inside scoped VMEM on v7x.
    tb = _round_up(min(block_b, _round_up(B, SUBLANE)), SUBLANE)
    b_pad = _round_up(B, tb)

    b1 = jnp.reshape(b1, (1, H)).astype(jnp.float32)
    b2 = jnp.reshape(b2, (A,)).astype(jnp.float32)

    # ---- layout plumbing (tiny, once per call, outside the kernel) ----
    # Fold b1 into w1:  [x | 1] @ [[w1], [b1]]  ==  x @ w1 + b1
    x_p = jnp.zeros((b_pad, obs + 1), jnp.float32)
    x_p = x_p.at[:B, :obs].set(x.astype(jnp.float32))
    x_p = x_p.at[:, obs].set(1.0)
    w1_aug = jnp.concatenate([w1.astype(jnp.float32), b1], axis=0)     # (OBS+1, H)
    # Pack lane-padded w2 and b2 into one resident buffer -> single dense DMA.
    w2b = jnp.zeros((H + SUBLANE, a_pad), jnp.float32)
    w2b = w2b.at[:H, :A].set(w2.astype(jnp.float32))
    w2b = w2b.at[H, :A].set(b2)

    grid = (b_pad // tb,)
    out = pl.pallas_call(
        dqn_kernel,
        out_shape=jax.ShapeDtypeStruct((b_pad, a_pad), jnp.float32),
        grid_spec=pltpu.PrefetchScalarGridSpec(
            num_scalar_prefetch=0,
            grid=grid,
            in_specs=[
                # batch-tiled activations: new tile each grid step
                pl.BlockSpec((tb, obs + 1), lambda i: (i, 0)),
                # weights: constant index_map -> DMA'd once, resident across grid
                pl.BlockSpec((obs + 1, H), lambda i: (0, 0)),
                pl.BlockSpec((H + SUBLANE, a_pad), lambda i: (0, 0)),
            ],
            out_specs=pl.BlockSpec((tb, a_pad), lambda i: (i, 0)),
        ),
        compiler_params=pltpu.CompilerParams(
            # batch tiles are independent -> megacore sharding on v7x
            dimension_semantics=("parallel",),
        ),
    )(x_p, w1_aug, w2b)

    return out[:B, :A]


def init_params(key, observation_space, action_space, hidden_size):
    """Deterministic init mimicking PyTorch nn.Linear defaults:
    U(-1/sqrt(fan_in), 1/sqrt(fan_in)) for both weight and bias."""
    k1, k2, k3, k4 = jax.random.split(key, 4)
    bound1 = 1.0 / jnp.sqrt(observation_space)
    bound2 = 1.0 / jnp.sqrt(hidden_size)
    # Stored as (in, out), i.e. transposed vs. PyTorch's (out, in).
    w1 = jax.random.uniform(k1, (observation_space, hidden_size),
                            minval=-bound1, maxval=bound1, dtype=jnp.float32)
    b1 = jax.random.uniform(k2, (1, hidden_size),
                            minval=-bound1, maxval=bound1, dtype=jnp.float32)
    w2 = jax.random.uniform(k3, (hidden_size, action_space),
                            minval=-bound2, maxval=bound2, dtype=jnp.float32)
    b2 = jax.random.uniform(k4, (1, action_space),
                            minval=-bound2, maxval=bound2, dtype=jnp.float32)
    return w1, b1, w2, b2


if __name__ == "__main__":
    # CartPole-v1: observation_space = 4, action_space = 2.
    OBS, ACT, HIDDEN = 4, 2, 256
    BATCH = 30          # deliberately not a tile multiple -> exercises batch padding
    BLOCK_B = 8         # small tile so this small example still runs a 4-step grid

    key = jax.random.PRNGKey(0)
    kx, kp = jax.random.split(key)
    x = jax.random.normal(kx, (BATCH, OBS), dtype=jnp.float32)
    w1, b1, w2, b2 = init_params(kp, OBS, ACT, HIDDEN)

    out = dqn_forward(x, w1, b1, w2, b2, block_b=BLOCK_B)
    out = jax.block_until_ready(out)

    # Pure-JAX reference check (PyTorch forward semantics).
    ref = jnp.maximum(x @ w1 + b1, 0.0) @ w2 + b2
    assert out.shape == (BATCH, ACT)
    assert jnp.allclose(out, ref, atol=1e-4, rtol=1e-4), \
        float(jnp.max(jnp.abs(out - ref)))

    print("KERNEL_OK")
</pallas_src>

<mosaic_0001>
module attributes {stable_mosaic.version = 11 : i64} {
  func.func @dqn_kernel(%arg0: i32, %arg1: memref<8x5xf32, #tpu.memory_space<vmem>>, %arg2: memref<5x256xf32, #tpu.memory_space<vmem>>, %arg3: memref<264x128xf32, #tpu.memory_space<vmem>>, %arg4: memref<8x128xf32, #tpu.memory_space<vmem>>) attributes {dimension_semantics = [#tpu.dimension_semantics<parallel>], iteration_bounds = array<i64: 4>, scalar_prefetch = 0 : i64, scratch_operands = 0 : i64, tpu.core_type = #tpu.core_type<tc>, window_params = [{transform_indices = @transform_0, window_bounds = array<i64: 8, 5>}, {pipeline_mode = #tpu.pipeline_mode<synchronous>, transform_indices = @transform_1, window_bounds = array<i64: 5, 256>}, {pipeline_mode = #tpu.pipeline_mode<synchronous>, transform_indices = @transform_2, window_bounds = array<i64: 264, 128>}, {transform_indices = @transform_3, window_bounds = array<i64: 8, 128>}]} {
    %c0 = arith.constant 0 : index
    %c0_0 = arith.constant 0 : index
    %0 = vector.load %arg1[%c0, %c0_0] : memref<8x5xf32, #tpu.memory_space<vmem>>, vector<8x5xf32>
    %c0_1 = arith.constant 0 : index
    %c0_2 = arith.constant 0 : index
    %1 = vector.load %arg2[%c0_1, %c0_2] : memref<5x256xf32, #tpu.memory_space<vmem>>, vector<5x256xf32>
    %cst = arith.constant dense<0.000000e+00> : vector<8x256xf32>
    %2 = tpu.matmul %0, %1, %cst {dimension_numbers = #tpu.dot_dimension_numbers<[1], [0], [0], [1], [0, 0, 1, 1], [], []>} : vector<8x5xf32>, vector<5x256xf32>, vector<8x256xf32> -> vector<8x256xf32>
    %cst_3 = arith.constant 0.000000e+00 : f32
    %3 = vector.broadcast %cst_3 : f32 to vector<8x256xf32>
    %4 = arith.maximumf %2, %3 : vector<8x256xf32>
    %c0_4 = arith.constant 0 : index
    %c0_5 = arith.constant 0 : index
    %5 = vector.load %arg3[%c0_4, %c0_5] : memref<264x128xf32, #tpu.memory_space<vmem>>, vector<256x128xf32>
    %c256 = arith.constant 256 : index
    %c0_6 = arith.constant 0 : index
    %6 = vector.load %arg3[%c256, %c0_6] : memref<264x128xf32, #tpu.memory_space<vmem>>, vector<1x128xf32>
    %cst_7 = arith.constant dense<0.000000e+00> : vector<8x128xf32>
    %7 = tpu.matmul %4, %5, %cst_7 {dimension_numbers = #tpu.dot_dimension_numbers<[1], [0], [0], [1], [0, 0, 1, 1], [], []>} : vector<8x256xf32>, vector<256x128xf32>, vector<8x128xf32> -> vector<8x128xf32>
    %8 = vector.broadcast %6 : vector<1x128xf32> to vector<8x128xf32>
    %9 = arith.addf %7, %8 : vector<8x128xf32>
    %c0_8 = arith.constant 0 : index
    %c0_9 = arith.constant 0 : index
    %10 = vector.load %arg4[%c0_8, %c0_9] : memref<8x128xf32, #tpu.memory_space<vmem>>, vector<8x128xf32>
    tpu.vector_store %arg4[%c0_8, %c0_9], %9 {strides = array<i32>} : memref<8x128xf32, #tpu.memory_space<vmem>>, vector<8x128xf32>,
    return
  }
  func.func @transform_0(%arg0: i32) -> (i32, i32) {
    %c0_i32 = arith.constant 0 : i32
    %c0_i32_0 = arith.constant 0 : i32
    return %arg0, %c0_i32 : i32, i32
  }
  func.func @transform_1(%arg0: i32) -> (i32, i32) {
    %c0_i32 = arith.constant 0 : i32
    %c0_i32_0 = arith.constant 0 : i32
    %c0_i32_1 = arith.constant 0 : i32
    return %c0_i32, %c0_i32_0 : i32, i32
  }
  func.func @transform_2(%arg0: i32) -> (i32, i32) {
    %c0_i32 = arith.constant 0 : i32
    %c0_i32_0 = arith.constant 0 : i32
    %c0_i32_1 = arith.constant 0 : i32
    return %c0_i32, %c0_i32_0 : i32, i32
  }
  func.func @transform_3(%arg0: i32) -> (i32, i32) {
    %c0_i32 = arith.constant 0 : i32
    %c0_i32_0 = arith.constant 0 : i32
    return %arg0, %c0_i32 : i32, i32
  }
}

</mosaic_0001>

<bundles_post_ra>
// kernel: dqn_forward.1
= control target key start
LH: loop header
LB: loop body
LE: loop exit
PB: predicated region body
PF: predicated region fallthrough
CT: control target
= control target key end

     0   :  { %s500_s12 = smov 0   ;;  %s629_s0 = inlined_call_operand.vmem [shape: f32[32,5], index: 0, kind: input, shape index: {}]   ;;  %s630_s1 = inlined_call_operand.vmem [shape: f32[5,256], index: 1, kind: input, shape index: {}]   ;;  %s631_s2 = inlined_call_operand.vmem [shape: f32[264,128], index: 2, kind: input, shape index: {}]   ;;  %s632_s3 = inlined_call_operand.vmem [shape: f32[32,128], index: 3, kind: output, shape index: {}]  }
   0x1 LB: > { %s414_s13 = sadd.s32 4294967295, %s477_s12   ;;  %p418_p0 = scmp.ge.s32.totalorder %s477_s12, 1  ;;  %s477_s12 = sphi %s500_s12, %s13_s12  }
   0x2   : > { %p136_p1 = scmp.lt.s32.totalorder %s477_s12, 5 }
   0x4   : > { %p137_p2 = pnand %p418_p0, %p136_p1 }
   0x5   : > { %p158_p3 = scmp.lt.s32.totalorder (!%p137_p2), %s414_s13, 3 }
   0x6   : > { %140 = sbr.rel (%p137_p2) target bundleno = 415 (0x19f), region = 32 }
   0xb   : > { %v168_v0 = vld [vmem:[%s630_s1 + $0x8] sm:$0x1f]  ;;  %vm173_vm0 = vcmask 1044480   ;;  %v167_v1 = vld [vmem:[%s630_s1] sm:$0x1f]  ;;  %v479_v2 = vmov 0.0  }
   0xc   : > { %421 = vmatprep.subr.msk.mxu0 %vm173_vm0, %v168_v0  ;;  %244 = vmatprep.mubr.f32.mxu0 %v479_v2  ;;  %v284_v3 = vld [vmem:[%s631_s2 + $0xf8] sm:$0xff]  ;;  %v283_v5 = vld [vmem:[%s631_s2 + $0xf0] sm:$0xff]  ;;  %s634_s13 = smov (!%p158_p3, %s414_s13), 3  ;;  %v282_v7 = vld [vmem:[%s631_s2 + $0xe8] sm:$0xff]  ;;  %vm169_vm1 = vcmask 39936  }
   0xd   : > { %v268_v4 = vld [vmem:[%s631_s2 + $0x78] sm:$0xff]  ;;  %422 = vmatpush1.msk.msra.mxu0 %vm173_vm0, %v167_v1  ;;  %427 = vmatprep.subr.mxu1 %v284_v3  ;;  %v267_v6 = vld [vmem:[%s631_s2 + $0x70] sm:$0xff]  ;;  %v266_v8 = vld [vmem:[%s631_s2 + $0x68] sm:$0xff]  ;;  %s419_s30 = sshll.u32 %s634_s13, 3 }
   0xe   : > { %428 = vmatpush3.msra.mxu1 %v268_v4  ;;  %v281_v9 = vld [vmem:[%s631_s2 + $0xe0] sm:$0xff]  ;;  %s161_s8 = scalar_lea.vmem %s629_s0, %s419_s30  ;;  %v280_v12 = vld [vmem:[%s631_s2 + $0xd8] sm:$0xff]  ;;  %v279_v14 = vld [vmem:[%s631_s2 + $0xd0] sm:$0xff]  ;;  %s165_s17 = scalar_lea.vmem %s632_s3, %s419_s30 }
   0xf   : > { %429 = vmatprep.subr.mxu1 %v283_v5  ;;  %v265_v10 = vld [vmem:[%s631_s2 + $0x60] sm:$0xff]  ;;  %v264_v13 = vld [vmem:[%s631_s2 + $0x58] sm:$0xff]  ;;  %v263_v15 = vld [vmem:[%s631_s2 + $0x50] sm:$0xff] }
  0x10   : > { %430 = vmatpush3.msra.mxu1 %v267_v6  ;;  %v166_v11 = vld [vmem:[%s161_s8] sm:$0xff]  ;;  %v278_v16 = vld [vmem:[%s631_s2 + $0xc8] sm:$0xff]  ;;  %v276_v20 = vld [vmem:[%s631_s2 + $0xb8] sm:$0xff] }
  0x11   : > { %431 = vmatprep.subr.mxu1 %v282_v7  ;;  %423 = vmatmul.mubr.msk.f32.vlgmr.msra.gmra.mxu0 %vm169_vm1, %v166_v11  ;;  %v262_v17 = vld [vmem:[%s631_s2 + $0x48] sm:$0xff]  ;;  %v277_v18 = vld [vmem:[%s631_s2 + $0xc0] sm:$0xff]  ;;  %v260_v21 = vld [vmem:[%s631_s2 + $0x38] sm:$0xff] }
  0x12   : > { %432 = vmatpush3.msra.mxu1 %v266_v8  ;;  %v261_v19 = vld [vmem:[%s631_s2 + $0x40] sm:$0xff]  ;;  %v275_v22 = vld [vmem:[%s631_s2 + $0xb0] sm:$0xff]  ;;  %v274_v24 = vld [vmem:[%s631_s2 + $0xa8] sm:$0xff] }
  0x13   : > { %433 = vmatprep.subr.mxu1 %v281_v9  ;;  %v259_v23 = vld [vmem:[%s631_s2 + $0x30] sm:$0xff]  ;;  %v258_v25 = vld [vmem:[%s631_s2 + $0x28] sm:$0xff]  ;;  %v273_v26 = vld [vmem:[%s631_s2 + $0xa0] sm:$0xff] }
  0x14   : > { %434 = vmatpush3.msra.mxu1 %v265_v10  ;;  %v257_v27 = vld [vmem:[%s631_s2 + $0x20] sm:$0xff]  ;;  %v272_v28 = vld [vmem:[%s631_s2 + $0x98] sm:$0xff]  ;;  %v271_v30 = vld [vmem:[%s631_s2 + $0x90] sm:$0xff] }
  0x15   : > { %435 = vmatprep.subr.mxu1 %v280_v12  ;;  %v256_v29 = vld [vmem:[%s631_s2 + $0x18] sm:$0xff]  ;;  %v255_v31 = vld [vmem:[%s631_s2 + $0x10] sm:$0xff]  ;;  %v270_v32 = vld [vmem:[%s631_s2 + $0x88] sm:$0xff] }
  0x16   : > { %436 = vmatpush3.msra.mxu1 %v264_v13  ;;  %v254_v33 = vld [vmem:[%s631_s2 + $0x8] sm:$0xff]  ;;  %v269_v34 = vld [vmem:[%s631_s2 + $0x80] sm:$0xff] }
  0x17   : > { %437 = vmatprep.subr.mxu1 %v279_v14  ;;  %v253_v35 = vld [vmem:[%s631_s2] sm:$0xff] }
  0x18   : > { %438 = vmatpush3.msra.mxu1 %v263_v15  ;;  %v424_v41 = vld [vmem:[%s631_s2 + $0x100] ss:$0 sm:$0xff] }
  0x19   : > { %439 = vmatprep.subr.mxu1 %v278_v16 }
  0x1a   : > { %440 = vmatpush3.msra.mxu1 %v262_v17 }
  0x1b   : > { %441 = vmatprep.subr.mxu1 %v277_v18 }
  0x1c   : > { %442 = vmatpush3.msra.mxu1 %v261_v19 }
  0x1d   : > { %443 = vmatprep.subr.mxu1 %v276_v20 }
  0x1e   : > { %444 = vmatpush3.msra.mxu1 %v260_v21 }
  0x1f   : > { %445 = vmatprep.subr.mxu1 %v275_v22 }
  0x20   : > { %446 = vmatpush3.msra.mxu1 %v259_v23 }
  0x21   : > { %447 = vmatprep.subr.mxu1 %v274_v24 }
  0x22   : > { %448 = vmatpush3.msra.mxu1 %v258_v25 }
  0x23   : > { %449 = vmatprep.subr.mxu1 %v273_v26 }
  0x24   : > { %450 = vmatpush3.msra.mxu1 %v257_v27 }
  0x25   : > { %451 = vmatprep.subr.mxu1 %v272_v28 }
  0x26   : > { %452 = vmatpush3.msra.mxu1 %v256_v29 }
  0x27   : > { %453 = vmatprep.subr.mxu1 %v271_v30 }
  0x28   : > { %454 = vmatpush3.msra.mxu1 %v255_v31 }
  0x29   : > { %455 = vmatprep.subr.mxu1 %v270_v32 }
  0x2a   : > { %456 = vmatpush3.msra.mxu1 %v254_v33 }
  0x2b   : > { %457 = vmatprep.subr.mxu1 %v269_v34 }
  0x2c   : > { %458 = vmatpush3.msra.mxu1 %v253_v35 }
  0xd1   : > { %v246_v36 = vpop.f32.mrf.mxu0 }
  0xd2   : > { %v251_v39 = vmax.f32 %v246_v36, 0.0 }
  0xd3   : > { %v248_v37 = vpop.f32.mrf.mxu0 }
  0xd4   : > { %v252_v38 = vmax.f32 %v248_v37, 0.0 }
  0xd6   : > { %354 = vmatprep.mubr.f32.mxu1 %v252_v38 }
  0xd7   : > { %355 = vmatmul.mubr.f32.vlgmr.msra.gmra.mxu1 %v251_v39 }
 0x197   : > { %v459_v40 = vpop.f32.mrf.mxu1 }
 0x199   : > { %v460_v42 = vpop.f32.mrf.mxu1 }
 0x19a   : > { %v461_v43 = vadd.f32 %v460_v42, %v459_v40 }
 0x19c   : > { %v357_v44 = vadd.f32 %v461_v43, %v424_v41 }
 0x19e   : > { %360 = vst [vmem:[%s165_s17] sm:$0xff] %v357_v44 }
 0x19f PF: > { %s13_s12 = sadd.s32 1, %s477_s12  }
 0x1a0   : > { %p10_p4 = scmp.ge.s32.totalorder %s13_s12, 6  }
 0x1a2   :  { %12 = sbr.rel (!%p10_p4) target bundleno = 1 (0x1), region = 62 }

</bundles_post_ra>
